<compile_context>
chip_gen: v7x
topology: tpu7x:2x2x1
jax: 0.10.0
libtpu: 0.0.40
codegen_flags: <defaults>
</compile_context>

<pallas_src>
import functools

import jax
import jax.numpy as jnp
from jax.experimental import pallas as pl
from jax.experimental.pallas import tpu as pltpu


def _round_up(x, m):
    return ((x + m - 1) // m) * m


def _cdiv(a, b):
    return (a + b - 1) // b


def _vmem_budget_bytes():
    """Generation-aware (tile budget, vmem_limit) in bytes."""
    phys = None
    try:
        phys = pltpu.get_tpu_info().vmem_capacity_bytes
    except Exception:
        phys = None
    if phys is None:
        phys = 64 * 1024 * 1024            # conservative: v7x per-TensorCore
    if phys >= 128 * 1024 * 1024:          # v5e / v6e: plenty of VMEM
        return 48 * 1024 * 1024, 64 * 1024 * 1024
    return 24 * 1024 * 1024, 32 * 1024 * 1024


def _prefer_f32_compute(dtype):
    """bf16 in-kernel compute only pays off (and is only supported well) on
    v6e/v7x; v5e and older have no bf16 VPU/EUP, so cast to f32 after load."""
    if dtype != jnp.bfloat16:
        return True
    try:
        kind = jax.devices()[0].device_kind.lower()
    except Exception:
        return True
    return any(t in kind for t in ("v2", "v3", "v4", "v5"))


def _circle_loss_kernel(gold_ref, pred_ref, out_ref, *, optim_pos, optim_neg,
                        temperature, bsz, need_row_mask, mask_gold_in_neg,
                        compute_f32):
    x = pred_ref[...]                                         # (tm, nc)
    if compute_f32 and x.dtype != jnp.float32:
        x = x.astype(jnp.float32)
    tm, nc = x.shape

    # Row-wise softmax pieces: e = exp(x - max), r = 1 / sum(e).
    m = jnp.max(x, axis=-1, keepdims=True)
    e = jnp.exp(x - m)                                        # (tm, nc)
    sum_e = jnp.sum(e.astype(jnp.float32), axis=-1, keepdims=True)
    r = pl.reciprocal(sum_e, approx=False)                    # (tm, 1) f32

    gold = gold_ref[...]                                      # (tm, 1) int32
    col = jax.lax.broadcasted_iota(jnp.int32, (tm, nc), 1)
    is_gold = col == gold                                     # (tm, nc) bool

    # Gold-column probability (exactly one nonzero per row, so the sum is exact
    # even in bf16).
    e_gold = jnp.sum(jnp.where(is_gold, e, 0.0), axis=-1,
                     keepdims=True).astype(jnp.float32)
    p_gold = e_gold * r                                       # (tm, 1) f32

    # Positive branch collapses to the gold column only -> one (tm, 1) exp.
    alpha_p = jnp.maximum(optim_pos - p_gold, 0.0)
    p_sum = jnp.exp(-p_gold * temperature * alpha_p)          # (tm, 1)

    # Negative-branch exponent, specialized on optim_neg at trace time.
    if optim_neg == 0.0:
        # p_j = e_j * r  =>  T * p_j^2 = (T * r^2) * e_j^2 ; p never built.
        scale = ((temperature * r) * r).astype(e.dtype)       # (tm, 1)
        expo = (e * e) * scale
    else:
        p = e * r.astype(e.dtype)                             # (tm, nc)
        diff = p - optim_neg
        if optim_neg > 0.0:                                   # clamp only if it can bite
            diff = jnp.maximum(diff, 0.0)
        expo = (p * temperature) * diff
    n_exp = jnp.exp(expo)                                     # (tm, nc)  EUP

    if mask_gold_in_neg:
        # Small-nc path: zero the gold column inside the reduction instead of
        # subtracting n_gold afterwards (avoids catastrophic cancellation when
        # p_gold ~ 1 and exp(T) is huge).
        n_term = jnp.where(is_gold, 0.0, n_exp)
        n_sum = jnp.sum(n_term.astype(jnp.float32), axis=-1, keepdims=True)
    else:
        n_all = jnp.sum(n_exp.astype(jnp.float32), axis=-1, keepdims=True)
        d_gold = p_gold - optim_neg
        if optim_neg > 0.0:
            d_gold = jnp.maximum(d_gold, 0.0)
        n_gold = jnp.exp(p_gold * temperature * d_gold)
        n_sum = n_all - n_gold

    loss = jnp.log1p(n_sum * p_sum)                           # (tm, 1) f32

    if need_row_mask:
        # Mask rows that only exist because the last batch tile is ragged.
        row = (pl.program_id(0) * tm
               + jax.lax.broadcasted_iota(jnp.int32, (tm, 1), 0))
        loss = jnp.where(row < bsz, loss, 0.0)

    # Per-tile partial sum, broadcast into a lane-dense (8, 128) output block.
    out_ref[...] = jnp.full((1, 8, 128), jnp.sum(loss), dtype=jnp.float32)


def circle_loss(pred, gold, *, optim_pos=1.0, optim_neg=0.0, temperature=10.0):
    """pred: (bsz, num_classes) float logits (f32 or bf16); gold: (bsz,) ints."""
    bsz, nc = pred.shape
    itemsize = jnp.dtype(pred.dtype).itemsize
    budget, vmem_limit = _vmem_budget_bytes()

    # Batch tile: double-buffered input tile plus ~7 live full-width f32-sized
    # temporaries per row must fit the per-generation VMEM budget.
    per_row = nc * (2 * itemsize + 7 * 4)
    max_tm = max(8, (budget // per_row) // 8 * 8)

    if bsz < 8:
        tm = bsz                                    # full-dim block (sublane rule)
    else:
        tm = min(512, max_tm, (bsz // 8) * 8)
        nt = _cdiv(bsz, tm)
        if nt > 1 and nt % 2 == 1:
            # v7x megacore: prefer an even tile count so both TCs split evenly.
            tm = max(8, _round_up(_cdiv(bsz, nt + 1), 8))
    num_tiles = _cdiv(bsz, tm)

    gold2d = gold.astype(jnp.int32).reshape(bsz, 1)

    kernel = functools.partial(
        _circle_loss_kernel,
        optim_pos=float(optim_pos),
        optim_neg=float(optim_neg),
        temperature=float(temperature),
        bsz=bsz,
        need_row_mask=(bsz % tm) != 0,
        mask_gold_in_neg=(nc < 4096),
        compute_f32=_prefer_f32_compute(pred.dtype),
    )

    partial_sums = pl.pallas_call(
        kernel,
        grid=(num_tiles,),
        out_shape=jax.ShapeDtypeStruct((num_tiles, 8, 128), jnp.float32),
        in_specs=[
            pl.BlockSpec((tm, 1), lambda i: (i, 0)),     # gold column
            pl.BlockSpec((tm, nc), lambda i: (i, 0)),    # pred tile, full class dim
        ],
        out_specs=pl.BlockSpec((1, 8, 128), lambda i: (i, 0, 0)),
        compiler_params=pltpu.CompilerParams(
            dimension_semantics=("parallel",),
            vmem_limit_bytes=vmem_limit),
    )(gold2d, pred)

    # Tiny final reduction over per-tile partial sums in the wrapper.
    return jnp.sum(partial_sums[:, 0, 0]) / bsz


def circle_loss_ref(pred, gold, *, optim_pos=1.0, optim_neg=0.0,
                    temperature=10.0):
    """Pure-JAX reference mirroring the PyTorch module."""
    p = jax.nn.softmax(pred.astype(jnp.float32), axis=-1)
    nc = p.shape[-1]
    pos = jax.nn.one_hot(gold, nc, dtype=jnp.float32)
    neg = 1.0 - pos
    alpha_p = jnp.maximum(optim_pos - p, 0.0)
    alpha_n = jnp.maximum(p - optim_neg, 0.0)
    p_d = jnp.sum(jnp.exp(-p * temperature * alpha_p) * pos, axis=1,
                  keepdims=True)
    n_d = jnp.sum(jnp.exp(p * temperature * alpha_n) * neg, axis=1,
                  keepdims=True)
    return jnp.mean(jnp.log(1.0 + n_d * p_d))


if __name__ == "__main__":
    key = jax.random.PRNGKey(0)
    k_pred, k_gold = jax.random.split(key)

    bsz, num_classes = 8, 32
    pred = jax.random.normal(k_pred, (bsz, num_classes), dtype=jnp.float32)
    gold = jax.random.randint(k_gold, (bsz,), 0, num_classes, dtype=jnp.int32)

    loss = circle_loss(pred, gold, optim_pos=1.0, optim_neg=0.0,
                       temperature=10.0)
    loss = jax.block_until_ready(loss)

    ref = jax.block_until_ready(
        circle_loss_ref(pred, gold, optim_pos=1.0, optim_neg=0.0,
                        temperature=10.0))
    assert jnp.allclose(loss, ref, rtol=1e-5, atol=1e-5), (loss, ref)

    print("KERNEL_OK")
</pallas_src>

<mosaic_0001>
module attributes {stable_mosaic.version = 11 : i64} {
  func.func @_circle_loss_kernel(%arg0: i32, %arg1: memref<8x1xi32, #tpu.memory_space<vmem>>, %arg2: memref<8x32xf32, #tpu.memory_space<vmem>>, %arg3: memref<1x8x128xf32, #tpu.memory_space<vmem>>) attributes {dimension_semantics = [#tpu.dimension_semantics<parallel>], iteration_bounds = array<i64: 1>, scalar_prefetch = 0 : i64, scratch_operands = 0 : i64, tpu.core_type = #tpu.core_type<tc>, window_params = [{transform_indices = @transform_0, window_bounds = array<i64: 8, 1>}, {transform_indices = @transform_1, window_bounds = array<i64: 8, 32>}, {transform_indices = @transform_2, window_bounds = array<i64: 1, 8, 128>}]} {
    %c0 = arith.constant 0 : index
    %c0_0 = arith.constant 0 : index
    %0 = vector.load %arg2[%c0, %c0_0] : memref<8x32xf32, #tpu.memory_space<vmem>>, vector<8x32xf32>
    %cst = arith.constant dense<0xFF800000> : vector<8xf32>
    %1 = vector.multi_reduction <maximumf>, %0, %cst [1] : vector<8x32xf32> to vector<8xf32>
    %2 = vector.shape_cast %1 : vector<8xf32> to vector<8x1xf32>
    %3 = vector.broadcast %2 : vector<8x1xf32> to vector<8x32xf32>
    %4 = arith.subf %0, %3 : vector<8x32xf32>
    %5 = math.exp %4 : vector<8x32xf32>
    %cst_1 = arith.constant dense<0.000000e+00> : vector<8xf32>
    %6 = vector.multi_reduction <add>, %5, %cst_1 [1] : vector<8x32xf32> to vector<8xf32>
    %7 = vector.shape_cast %6 : vector<8xf32> to vector<8x1xf32>
    %8 = tpu.reciprocal %7 : vector<8x1xf32> -> vector<8x1xf32>
    %c0_2 = arith.constant 0 : index
    %c0_3 = arith.constant 0 : index
    %9 = vector.load %arg1[%c0_2, %c0_3] : memref<8x1xi32, #tpu.memory_space<vmem>>, vector<8x1xi32>
    %10 = tpu.iota {dimensions = array<i32: 1>} : vector<8x32xi32>
    %11 = vector.broadcast %9 : vector<8x1xi32> to vector<8x32xi32>
    %12 = arith.cmpi eq, %10, %11 : vector<8x32xi32>
    %cst_4 = arith.constant 0.000000e+00 : f32
    %13 = vector.broadcast %cst_4 : f32 to vector<8x32xf32>
    %14 = arith.select %12, %5, %13 : vector<8x32xi1>, vector<8x32xf32>
    %cst_5 = arith.constant dense<0.000000e+00> : vector<8xf32>
    %15 = vector.multi_reduction <add>, %14, %cst_5 [1] : vector<8x32xf32> to vector<8xf32>
    %16 = vector.shape_cast %15 : vector<8xf32> to vector<8x1xf32>
    %17 = arith.mulf %16, %8 : vector<8x1xf32>
    %cst_6 = arith.constant 1.000000e+00 : f32
    %18 = vector.broadcast %cst_6 : f32 to vector<8x1xf32>
    %19 = arith.subf %18, %17 : vector<8x1xf32>
    %cst_7 = arith.constant 0.000000e+00 : f32
    %20 = vector.broadcast %cst_7 : f32 to vector<8x1xf32>
    %21 = arith.maximumf %19, %20 : vector<8x1xf32>
    %cst_8 = arith.constant 0.000000e+00 : f32
    %22 = vector.broadcast %cst_8 : f32 to vector<8x1xf32>
    %23 = arith.subf %22, %17 : vector<8x1xf32>
    %cst_9 = arith.constant 1.000000e+01 : f32
    %24 = vector.broadcast %cst_9 : f32 to vector<8x1xf32>
    %25 = arith.mulf %23, %24 : vector<8x1xf32>
    %26 = arith.mulf %25, %21 : vector<8x1xf32>
    %27 = math.exp %26 : vector<8x1xf32>
    %cst_10 = arith.constant 1.000000e+01 : f32
    %28 = vector.broadcast %cst_10 : f32 to vector<8x1xf32>
    %29 = arith.mulf %28, %8 : vector<8x1xf32>
    %30 = arith.mulf %29, %8 : vector<8x1xf32>
    %31 = arith.mulf %5, %5 : vector<8x32xf32>
    %32 = vector.broadcast %30 : vector<8x1xf32> to vector<8x32xf32>
    %33 = arith.mulf %31, %32 : vector<8x32xf32>
    %34 = math.exp %33 : vector<8x32xf32>
    %cst_11 = arith.constant 0.000000e+00 : f32
    %35 = vector.broadcast %cst_11 : f32 to vector<8x32xf32>
    %36 = arith.select %12, %35, %34 : vector<8x32xi1>, vector<8x32xf32>
    %cst_12 = arith.constant dense<0.000000e+00> : vector<8xf32>
    %37 = vector.multi_reduction <add>, %36, %cst_12 [1] : vector<8x32xf32> to vector<8xf32>
    %38 = vector.shape_cast %37 : vector<8xf32> to vector<8x1xf32>
    %39 = arith.mulf %38, %27 : vector<8x1xf32>
    %40 = math.log1p %39 : vector<8x1xf32>
    %41 = vector.shape_cast %40 : vector<8x1xf32> to vector<1x8x1xf32>
    %cst_13 = arith.constant dense<0.000000e+00> : vector<1xf32>
    %42 = vector.multi_reduction <add>, %41, %cst_13 [1, 2] : vector<1x8x1xf32> to vector<1xf32>
    %43 = vector.shape_cast %42 : vector<1xf32> to vector<1x1x1xf32>
    %44 = vector.extract %43[0, 0, 0] : f32 from vector<1x1x1xf32>
    %45 = vector.broadcast %44 : f32 to vector<1x8x128xf32>
    %c0_14 = arith.constant 0 : index
    %c0_15 = arith.constant 0 : index
    %c0_16 = arith.constant 0 : index
    %46 = vector.load %arg3[%c0_14, %c0_15, %c0_16] : memref<1x8x128xf32, #tpu.memory_space<vmem>>, vector<1x8x128xf32>
    tpu.vector_store %arg3[%c0_14, %c0_15, %c0_16], %45 {strides = array<i32>} : memref<1x8x128xf32, #tpu.memory_space<vmem>>, vector<1x8x128xf32>,
    return
  }
  func.func @transform_0(%arg0: i32) -> (i32, i32) {
    %c0_i32 = arith.constant 0 : i32
    %c0_i32_0 = arith.constant 0 : i32
    return %arg0, %c0_i32 : i32, i32
  }
  func.func @transform_1(%arg0: i32) -> (i32, i32) {
    %c0_i32 = arith.constant 0 : i32
    %c0_i32_0 = arith.constant 0 : i32
    return %arg0, %c0_i32 : i32, i32
  }
  func.func @transform_2(%arg0: i32) -> (i32, i32, i32) {
    %c0_i32 = arith.constant 0 : i32
    %c0_i32_0 = arith.constant 0 : i32
    %c0_i32_1 = arith.constant 0 : i32
    return %arg0, %c0_i32, %c0_i32_0 : i32, i32, i32
  }
}

</mosaic_0001>

<bundles_post_ra>
// kernel: tpu_custom_call.1
= control target key start
LH: loop header
LB: loop body
LE: loop exit
PB: predicated region body
PF: predicated region fallthrough
CT: control target
= control target key end

     0   :  { %vm13_vm0 = vcmask 261120   ;;  %s171_s0 = inlined_call_operand.vmem [shape: s32[8,1], index: 0, kind: input, shape index: {}]   ;;  %s172_s1 = inlined_call_operand.vmem [shape: f32[8,32], index: 1, kind: input, shape index: {}]   ;;  %s173_s2 = inlined_call_operand.hbm [shape: f32[1,8,128], index: 2, kind: output, shape index: {}]  }
   0x1   :  { %v12_v0 = vld [vmem:[%s172_s1] sm:$0xff] }
   0x2   :  { %v24_v1 = vld [vmem:[%s171_s0] sm:$0xff] }
   0x3   :  { %7 = vsyncpa [#allocation3], 0  ;;  %v14_v2 = vsel %vm13_vm0, %v12_v0, -inf  ;;  %v130_v3 = vmov 0   ;;  %v25_v7 = vlaneseq  ;;  %vm63_vm2 = vcmask 7168   ;;  %s131_s0 = smov [#allocation2]  }
   0x4   :  { %94 = vset.pattern.permute.xlu1 %v130_v3  ;;  %95 = vset.pattern.permute.xlu0 %v130_v3  ;;  %s82_s1 = sshll.u32 %s131_s0, 4  ;;  %s83_s1 = int_to_ptr.vmem [resolvable:$true] %s82_s1 }
   0x5   :  { %15 = vmax.xlane.f32.xlu0 %v14_v2  ;;  %28 = vperm.xlu1 %94, %v24_v1   ;;  %v26_v8 = vand.u32 127, %v25_v7  ;;  %s106_s14 = scalar_lea.vmem %s83_s1, 128  ;;  %p111_p1 = scmp.lt.s32.totalorder %s83_s1, %s83_s1 }
   0x6   :  { %p107_p0 = scmp.ne.s32.totalorder %s83_s1, %s106_s14  ;;  %p112_p2 = scmp.lt.s32.totalorder %s106_s14, %s106_s14 }
   0x8   :  { %p113_p3 = por %p112_p2, %p111_p1 }
   0xa   :  { %p114_p4 = pnand %p113_p3, %p107_p0 }
  0x84   :  { %v29_v9 = vpop.permute.xlu1 %28 }
  0x85   :  { %vm30_vm1 = vcmp.eq.s32.totalorder %v26_v8, %v29_v9 }
  0x92   :  { %v16_v4 = vpop.xlane.xlu0 %15 }
  0x93   :  { %v17_v5 = vsub.f32 %v12_v0, %v16_v4 }
  0x95   :  { %v18_v6 = vmul.f32 1.442695, %v17_v5 }
  0x97   :  { %96 = vpow2.f32 %v18_v6 }
  0xa1   :  { %v97_v10 = vpop.eup %96 }
  0xa2   :  { %v20_v11 = vsel %vm13_vm0, %v97_v10, 0.0  ;;  %v31_v12 = vsel %vm30_vm1, %v97_v10, 0.0  ;;  %v45_v18 = vmul.f32 %v97_v10, %v97_v10 }
  0xa3   :  { %21 = vadd.xlane.f32.xlu0 %v20_v11  ;;  %v32_v13 = vsel %vm13_vm0, %v31_v12, 0.0 }
  0xa4   :  { %33 = vadd.xlane.f32.xlu1 %v32_v13 }
 0x130   :  { %v22_v14 = vpop.xlane.xlu0 %21 }
 0x131   :  { %98 = vrcp.f32 %v22_v14  ;;  %v34_v24 = vpop.xlane.xlu1 %33 }
 0x13b   :  { %v99_v15 = vpop.eup %98 }
 0x13c   :  { %v43_v16 = vmul.f32 10.0, %v99_v15  ;;  %v35_v25 = vmul.f32 %v99_v15, %v34_v24 }
 0x13e   :  { %v44_v17 = vmul.f32 %v99_v15, %v43_v16  ;;  %v36_v26 = vsub.f32 1.0, %v35_v25  ;;  %v38_v27 = vsub.f32 0.0, %v35_v25 }
 0x140   :  { %v46_v19 = vmul.f32 %v45_v18, %v44_v17  ;;  %v37_v28 = vmax.f32 %v36_v26, 0.0  ;;  %v39_v29 = vmul.f32 10.0, %v38_v27 }
 0x142   :  { %v47_v20 = vmul.f32 1.442695, %v46_v19  ;;  %v40_v30 = vmul.f32 %v39_v29, %v37_v28 }
 0x144   :  { %100 = vpow2.f32 %v47_v20  ;;  %v41_v31 = vmul.f32 1.442695, %v40_v30 }
 0x146   :  { %102 = vpow2.f32 %v41_v31 }
 0x14e   :  { %v101_v21 = vpop.eup %100 }
 0x14f   :  { %v49_v22 = vsel %vm30_vm1, 0.0, %v101_v21 }
 0x150   :  { %v50_v23 = vsel %vm13_vm0, %v49_v22, 0.0  ;;  %v103_v32 = vpop.eup %102 }
 0x151   :  { %51 = vadd.xlane.f32.xlu0 %v50_v23 }
 0x1de   :  { %v52_v33 = vpop.xlane.xlu0 %51 }
 0x1df   :  { %v53_v34 = vmul.f32 %v103_v32, %v52_v33 }
 0x1e1   :  { %v54_v35 = vadd.f32 1.0, %v53_v34  ;;  %v57_v36 = vmul.f32 -0.5, %v53_v34  ;;  %v60_v38 = vand.u32 2147483647, %v53_v34 }
 0x1e3   :  { %104 = vlog2.f32 %v54_v35  ;;  %v58_v37 = vadd.f32 1.0, %v57_v36  ;;  %vm61_vm3 = vcmp.lt.f32.partialorder %v60_v38, 0.0004427343 }
 0x1e5   :  { %v59_v41 = vmul.f32 %v58_v37, %v53_v34 }
 0x1ed   :  { %v105_v39 = vpop.eup %104 }
 0x1ee   :  { %v56_v40 = vmul.f32 0.6931472, %v105_v39 }
 0x1f0   :  { %v62_v42 = vsel %vm61_vm3, %v59_v41, %v56_v40 }
 0x1f1   :  { %v64_v43 = vsel %vm63_vm2, %v62_v42, 0.0 }
 0x1f2   :  { %65 = vadd.xlane.f32.xlu0 %v64_v43 }
 0x27f   :  { %v66_v44 = vpop.xlane.xlu0 %65 }
 0x280   :  { %v67_v45 = vrot.slane %v66_v44, 4 }
 0x282   :  { %v68_v46 = vadd.f32 %v67_v45, %v66_v44 }
 0x284   :  { %v69_v47 = vrot.slane %v68_v46, 2 }
 0x286   :  { %v70_v48 = vadd.f32 %v69_v47, %v68_v46 }
 0x288   :  { %v71_v49 = vrot.slane %v70_v48, 1 }
 0x28a   :  { %v72_v50 = vadd.f32 %v71_v49, %v70_v48 }
 0x28c   :  { %90 = vpush %v72_v50 }
 0x2bd   :  { %s91_s13 = spop %90 }
 0x2be   :  { %v74_v51 = vstv %s91_s13 }
 0x2bf   :  { %75 = vst [vmem:[#allocation2] sm:$0xff] %v74_v51 }
 0x2c0   :  { %117 = shalt.err (!%p114_p4)
}
 0x2c1   :  { %s118_s17 = scalar_lea.hbm %s173_s2, 128 }
 0x2c2   :  { %p119_p5 = scmp.ne.s32.totalorder %s173_s2, %s118_s17  ;;  %p122_p6 = scmp.lt.u32.totalorder %s118_s17, %s173_s2 }
 0x2c4   :  { %p124_p7 = pnand %p122_p6, %p119_p5 }
 0x2c6   :  { %127 = shalt.err (!%p124_p7)
}
 0x2c7   :  { %85 = dma.vmem_to_hbm [thread:$0]  %s83_s1, 128, %s173_s2, [#allocation3]  }
 0x2c8   :  { %128 = dma.done.wait [#allocation3], 128  }
 0x2c9   :  { %129 = vsyncadd [#allocation3], 4294967168 }
 0x2ca   :  { %89 = vsyncpa [#allocation3], 1 }

</bundles_post_ra>
